<compile_context>
chip_gen: v6e
topology: v6e:2x2x1
jax: 0.10.0
libtpu: 0.0.40
codegen_flags: <defaults>
</compile_context>

<pallas_src>
import jax
import jax.numpy as jnp
from jax.experimental import pallas as pl
from jax.experimental.pallas import tpu as pltpu

_LANE = 128


def _round_up(x, m):
    return (x + m - 1) // m * m


def _make_ff_kernel(layers: int, non_lin: bool):
    """Kernel closure for `layers` hidden linear layers + output layer."""

    def kernel(*refs):
        # refs = (x_ref, w1, b1, ..., wL, bL, w_out, b_out, o_ref)
        x_ref = refs[0]
        o_ref = refs[-1]
        p = refs[1:-1]

        h = x_ref[...]  # f32 activations
        for i in range(layers):
            w = p[2 * i][...]          # bf16, resident in VMEM
            b = p[2 * i + 1][...]      # f32 [1, out_pad]
            acc = jnp.dot(h.astype(jnp.bfloat16), w,
                          preferred_element_type=jnp.float32) + b
            if non_lin:
                # sigmoid = 1 / (1 + exp(-x)); exp and reciprocal both on EUP.
                e = jnp.exp(-acc)
                h = pl.reciprocal(1.0 + e, approx=True)
            else:
                h = acc
            # Dropout(p=0) == identity (elided).
        w_out = p[2 * layers][...]
        b_out = p[2 * layers + 1][...]
        out = jnp.dot(h.astype(jnp.bfloat16), w_out,
                      preferred_element_type=jnp.float32) + b_out
        o_ref[...] = out.astype(o_ref.dtype)

    return kernel


def basic_feed_forward(x, params, *, label_nr, non_lin=True):
    """params = [(W1, b1), ..., (WL, bL), (W_out, b_out)], W: [in, out], b: [1, out]."""
    layers = len(params) - 1
    B, input_dim = x.shape
    hidden_dim = params[0][0].shape[1]

    din_p = _round_up(input_dim, _LANE)
    dh_p = _round_up(hidden_dim, _LANE)
    dout_p = _round_up(label_nr, _LANE)

    # --- pad + cast parameters (lane-dense, bf16 MXU operands) ---------------
    flat = []
    weight_bytes = 0
    flops = 0
    in_p = din_p
    for li, (w, b) in enumerate(params):
        out_p = dh_p if li < layers else dout_p
        wp = jnp.pad(w, ((0, in_p - w.shape[0]), (0, out_p - w.shape[1])))
        wp = wp.astype(jnp.bfloat16)
        bp = jnp.pad(jnp.reshape(b, (1, -1)), ((0, 0), (0, out_p - b.shape[-1])))
        bp = bp.astype(jnp.float32)
        flat += [wp, bp]
        weight_bytes += wp.size * 2 + bp.size * 4
        flops += 2 * in_p * out_p  # per batch row
        in_p = out_p

    # --- pick batch tile + VMEM budget (64 MiB worst case = v7x) -------------
    try:
        vmem_cap = int(pltpu.get_tpu_info().vmem_capacity_bytes)
    except Exception:  # conservative fallback
        vmem_cap = 64 * 1024 * 1024
    budget = int(vmem_cap * 0.6)

    # per-batch-row bytes: 2x double-buffered x tile + 2x out tile + f32 h.
    per_row = 2 * din_p * 4 + 2 * dout_p * 4 + 2 * max(din_p, dh_p, dout_p) * 4
    tb_max = (budget - weight_bytes) // max(per_row, 1)
    tb_max = max(8, min(1024, tb_max) // 8 * 8)
    TB = min(tb_max, _round_up(B, 8))
    B_pad = _round_up(B, TB)

    x_p = jnp.pad(x.astype(jnp.float32),
                  ((0, B_pad - B), (0, din_p - input_dim)))

    # --- specs ----------------------------------------------------------------
    x_spec = pl.BlockSpec((TB, din_p), lambda i: (i, 0))
    o_spec = pl.BlockSpec((TB, dout_p), lambda i: (i, 0))
    param_specs = [pl.BlockSpec(a.shape, lambda i: (0, 0)) for a in flat]

    est_vmem = weight_bytes + TB * per_row + (2 << 20)
    vmem_limit = int(min(max(est_vmem, 16 << 20), vmem_cap))

    cost = pl.CostEstimate(
        flops=int(B_pad * flops),
        transcendentals=int(B_pad * dh_p * layers) if non_lin else 0,
        bytes_accessed=int(x_p.size * 4 + weight_bytes + B_pad * dout_p * 4),
    )

    kernel = _make_ff_kernel(layers, non_lin)

    out_pad = pl.pallas_call(
        kernel,
        out_shape=jax.ShapeDtypeStruct((B_pad, dout_p), jnp.float32),
        grid_spec=pltpu.PrefetchScalarGridSpec(
            num_scalar_prefetch=0,
            grid=(B_pad // TB,),
            in_specs=[x_spec] + param_specs,
            out_specs=o_spec,
        ),
        compiler_params=pltpu.CompilerParams(
            dimension_semantics=("parallel",),
            vmem_limit_bytes=vmem_limit,
        ),
        cost_estimate=cost,
    )(x_p, *flat)

    return out_pad[:B, :label_nr]


def init_linear(key, fan_in, fan_out):
    """Deterministic PyTorch-style init: U(-1/sqrt(fan_in), 1/sqrt(fan_in))."""
    kw, kb = jax.random.split(key)
    bound = 1.0 / jnp.sqrt(jnp.float32(fan_in))
    w = jax.random.uniform(kw, (fan_in, fan_out), jnp.float32, -bound, bound)
    b = jax.random.uniform(kb, (1, fan_out), jnp.float32, -bound, bound)
    return w, b


if __name__ == "__main__":
    # Module config (defaults: layers=1, non_lin=True, sigmoid, dropout=0).
    batch = 8
    input_dim = 16
    hidden_dim = 32
    label_nr = 4
    layers = 1
    non_lin = True

    key = jax.random.PRNGKey(0)
    keys = jax.random.split(key, layers + 2)

    params = []
    in_d = input_dim
    for i in range(layers):
        params.append(init_linear(keys[i], in_d, hidden_dim))
        in_d = hidden_dim
    params.append(init_linear(keys[layers], hidden_dim, label_nr))

    # batch['w1'] equivalent input.
    x = jax.random.normal(keys[layers + 1], (batch, input_dim), jnp.float32)

    out = basic_feed_forward(x, params, label_nr=label_nr, non_lin=non_lin)
    out = jax.block_until_ready(out)

    # Pure-JAX reference emulating the kernel's bf16 MXU operands / f32 accum.
    h = x
    for w, b in params[:-1]:
        z = jnp.dot(h.astype(jnp.bfloat16), w.astype(jnp.bfloat16),
                    preferred_element_type=jnp.float32) + b
        h = jax.nn.sigmoid(z) if non_lin else z
    ref = jnp.dot(h.astype(jnp.bfloat16), params[-1][0].astype(jnp.bfloat16),
                  preferred_element_type=jnp.float32) + params[-1][1]

    assert out.shape == (batch, label_nr)
    assert jnp.allclose(out, ref, atol=2e-2, rtol=2e-2), (
        float(jnp.max(jnp.abs(out - ref))))

    print("KERNEL_OK")
</pallas_src>

<mosaic_0001>
module attributes {stable_mosaic.version = 11 : i64} {
  func.func @kernel(%arg0: i32, %arg1: memref<8x128xf32, #tpu.memory_space<vmem>>, %arg2: memref<128x128xbf16, #tpu.memory_space<vmem>>, %arg3: memref<1x128xf32, #tpu.memory_space<vmem>>, %arg4: memref<128x128xbf16, #tpu.memory_space<vmem>>, %arg5: memref<1x128xf32, #tpu.memory_space<vmem>>, %arg6: memref<8x128xf32, #tpu.memory_space<vmem>>) attributes {dimension_semantics = [#tpu.dimension_semantics<parallel>], iteration_bounds = array<i64: 1>, scalar_prefetch = 0 : i64, scratch_operands = 0 : i64, tpu.core_type = #tpu.core_type<tc>, window_params = [{transform_indices = @transform_0, window_bounds = array<i64: 8, 128>}, {pipeline_mode = #tpu.pipeline_mode<synchronous>, transform_indices = @transform_1, window_bounds = array<i64: 128, 128>}, {pipeline_mode = #tpu.pipeline_mode<synchronous>, transform_indices = @transform_2, window_bounds = array<i64: 1, 128>}, {pipeline_mode = #tpu.pipeline_mode<synchronous>, transform_indices = @transform_3, window_bounds = array<i64: 128, 128>}, {pipeline_mode = #tpu.pipeline_mode<synchronous>, transform_indices = @transform_4, window_bounds = array<i64: 1, 128>}, {transform_indices = @transform_5, window_bounds = array<i64: 8, 128>}]} {
    %c0 = arith.constant 0 : index
    %c0_0 = arith.constant 0 : index
    %0 = vector.load %arg1[%c0, %c0_0] : memref<8x128xf32, #tpu.memory_space<vmem>>, vector<8x128xf32>
    %c0_1 = arith.constant 0 : index
    %c0_2 = arith.constant 0 : index
    %1 = vector.load %arg2[%c0_1, %c0_2] : memref<128x128xbf16, #tpu.memory_space<vmem>>, vector<128x128xbf16>
    %c0_3 = arith.constant 0 : index
    %c0_4 = arith.constant 0 : index
    %2 = vector.load %arg3[%c0_3, %c0_4] : memref<1x128xf32, #tpu.memory_space<vmem>>, vector<1x128xf32>
    %3 = arith.truncf %0 : vector<8x128xf32> to vector<8x128xbf16>
    %cst = arith.constant dense<0.000000e+00> : vector<8x128xf32>
    %4 = tpu.matmul %3, %1, %cst {dimension_numbers = #tpu.dot_dimension_numbers<[1], [0], [0], [1], [0, 0, 1, 1], [], []>} : vector<8x128xbf16>, vector<128x128xbf16>, vector<8x128xf32> -> vector<8x128xf32>
    %5 = vector.broadcast %2 : vector<1x128xf32> to vector<8x128xf32>
    %6 = arith.addf %4, %5 : vector<8x128xf32>
    %cst_5 = arith.constant 0.000000e+00 : f32
    %7 = vector.broadcast %cst_5 : f32 to vector<8x128xf32>
    %8 = arith.subf %7, %6 : vector<8x128xf32>
    %9 = math.exp %8 : vector<8x128xf32>
    %cst_6 = arith.constant 1.000000e+00 : f32
    %10 = vector.broadcast %cst_6 : f32 to vector<8x128xf32>
    %11 = arith.addf %10, %9 : vector<8x128xf32>
    %12 = tpu.reciprocal %11 {approx = true} : vector<8x128xf32> -> vector<8x128xf32>
    %c0_7 = arith.constant 0 : index
    %c0_8 = arith.constant 0 : index
    %13 = vector.load %arg4[%c0_7, %c0_8] : memref<128x128xbf16, #tpu.memory_space<vmem>>, vector<128x128xbf16>
    %c0_9 = arith.constant 0 : index
    %c0_10 = arith.constant 0 : index
    %14 = vector.load %arg5[%c0_9, %c0_10] : memref<1x128xf32, #tpu.memory_space<vmem>>, vector<1x128xf32>
    %15 = arith.truncf %12 : vector<8x128xf32> to vector<8x128xbf16>
    %cst_11 = arith.constant dense<0.000000e+00> : vector<8x128xf32>
    %16 = tpu.matmul %15, %13, %cst_11 {dimension_numbers = #tpu.dot_dimension_numbers<[1], [0], [0], [1], [0, 0, 1, 1], [], []>} : vector<8x128xbf16>, vector<128x128xbf16>, vector<8x128xf32> -> vector<8x128xf32>
    %17 = vector.broadcast %14 : vector<1x128xf32> to vector<8x128xf32>
    %18 = arith.addf %16, %17 : vector<8x128xf32>
    %c0_12 = arith.constant 0 : index
    %c0_13 = arith.constant 0 : index
    %19 = vector.load %arg6[%c0_12, %c0_13] : memref<8x128xf32, #tpu.memory_space<vmem>>, vector<8x128xf32>
    tpu.vector_store %arg6[%c0_12, %c0_13], %18 {strides = array<i32>} : memref<8x128xf32, #tpu.memory_space<vmem>>, vector<8x128xf32>,
    return
  }
  func.func @transform_0(%arg0: i32) -> (i32, i32) {
    %c0_i32 = arith.constant 0 : i32
    %c0_i32_0 = arith.constant 0 : i32
    return %arg0, %c0_i32 : i32, i32
  }
  func.func @transform_1(%arg0: i32) -> (i32, i32) {
    %c0_i32 = arith.constant 0 : i32
    %c0_i32_0 = arith.constant 0 : i32
    %c0_i32_1 = arith.constant 0 : i32
    return %c0_i32, %c0_i32_0 : i32, i32
  }
  func.func @transform_2(%arg0: i32) -> (i32, i32) {
    %c0_i32 = arith.constant 0 : i32
    %c0_i32_0 = arith.constant 0 : i32
    %c0_i32_1 = arith.constant 0 : i32
    return %c0_i32, %c0_i32_0 : i32, i32
  }
  func.func @transform_3(%arg0: i32) -> (i32, i32) {
    %c0_i32 = arith.constant 0 : i32
    %c0_i32_0 = arith.constant 0 : i32
    %c0_i32_1 = arith.constant 0 : i32
    return %c0_i32, %c0_i32_0 : i32, i32
  }
  func.func @transform_4(%arg0: i32) -> (i32, i32) {
    %c0_i32 = arith.constant 0 : i32
    %c0_i32_0 = arith.constant 0 : i32
    %c0_i32_1 = arith.constant 0 : i32
    return %c0_i32, %c0_i32_0 : i32, i32
  }
  func.func @transform_5(%arg0: i32) -> (i32, i32) {
    %c0_i32 = arith.constant 0 : i32
    %c0_i32_0 = arith.constant 0 : i32
    return %arg0, %c0_i32 : i32, i32
  }
}

</mosaic_0001>

<bundles_post_ra>
// kernel: tpu_custom_call.1
= control target key start
LH: loop header
LB: loop body
LE: loop exit
PB: predicated region body
PF: predicated region fallthrough
CT: control target
= control target key end

     0   :  { %10 = vsyncpa [#allocation3], 0  ;;  %s554_s0 = inlined_call_operand.hbm [shape: f32[8,128], index: 0, kind: input, shape index: {}]   ;;  %s555_s1 = inlined_call_operand.hbm [shape: bf16[128,128], index: 1, kind: input, shape index: {}]   ;;  %s556_s2 = inlined_call_operand.vmem [shape: f32[1,128], index: 2, kind: input, shape index: {}]   ;;  %s557_s3 = inlined_call_operand.hbm [shape: bf16[128,128], index: 3, kind: input, shape index: {}]   ;;  %s558_s4 = inlined_call_operand.vmem [shape: f32[1,128], index: 4, kind: input, shape index: {}]   ;;  %s559_s5 = inlined_call_operand.hbm [shape: f32[8,128], index: 5, kind: output, shape index: {}]  }
   0x1   :  { %11 = vsyncpa [#allocation6], 0 }
   0x2   :  { %12 = vsyncpa [#allocation4], 0  ;;  %s498_s18 = smov [#allocation5]  }
   0x3   :  { %s28_s19 = sshll.u32 %s498_s18, 4  ;;  %s29_s19 = int_to_ptr.vmem [resolvable:$true] %s28_s19 }
   0x4   :  { %s420_s20 = scalar_lea.vmem %s29_s19, 1024  ;;  %p425_p1 = scmp.lt.s32.totalorder %s29_s19, %s29_s19 }
   0x5   :  { %p421_p0 = scmp.ne.s32.totalorder %s29_s19, %s420_s20  ;;  %p426_p2 = scmp.lt.s32.totalorder %s420_s20, %s420_s20 }
   0x7   :  { %p427_p3 = por %p426_p2, %p425_p1 }
   0x9   :  { %p428_p4 = pnand %p427_p3, %p421_p0 }
   0xb   :  { %431 = shalt.err (!%p428_p4)
}
   0xc   :  { %s499_s21 = smov 64   ;;  %s500_s22 = smov 4  }
   0xd   :  { %34 = dma.hbm_to_vmem [thread:$0]  %s555_s1, 1024, %s29_s19, [#allocation6], %s499_s21, %s499_s21, %s500_s22  }
   0xe   :  { %s501_s25 = smov [#allocation2]   ;;  %s502_s27 = smov [#allocation7]  }
   0xf   :  { %s19_s26 = sshll.u32 %s501_s25, 4  ;;  %s42_s28 = sshll.u32 %s502_s27, 4  ;;  %s20_s26 = int_to_ptr.vmem [resolvable:$true] %s19_s26  ;;  %s43_s28 = int_to_ptr.vmem [resolvable:$true] %s42_s28 }
  0x10   :  { %s440_s29 = scalar_lea.vmem %s20_s26, 128  ;;  %p445_p6 = scmp.lt.s32.totalorder %s20_s26, %s20_s26 }
  0x11   :  { %p441_p5 = scmp.ne.s32.totalorder %s20_s26, %s440_s29  ;;  %p446_p7 = scmp.lt.s32.totalorder %s440_s29, %s440_s29 }
  0x13   :  { %p447_p8 = por %p446_p7, %p445_p6 }
  0x15   :  { %p448_p9 = pnand %p447_p8, %p441_p5 }
  0x17   :  { %451 = shalt.err (!%p448_p9)
}
  0x18   :  { %22 = dma.hbm_to_vmem [thread:$0]  %s554_s0, 128, %s20_s26, [#allocation3]  }
  0x19   :  { %s460_s7 = scalar_lea.vmem %s43_s28, 1024  ;;  %p465_p11 = scmp.lt.s32.totalorder %s43_s28, %s43_s28 }
  0x1a   :  { %p461_p10 = scmp.ne.s32.totalorder %s43_s28, %s460_s7  ;;  %p466_p12 = scmp.lt.s32.totalorder %s460_s7, %s460_s7 }
  0x1c   :  { %p467_p13 = por %p466_p12, %p465_p11 }
  0x1e   :  { %p468_p0 = pnand %p467_p13, %p461_p10 }
  0x20   :  { %471 = shalt.err (!%p468_p0)
}
  0x21   :  { %48 = dma.hbm_to_vmem [thread:$0]  %s557_s3, 1024, %s43_s28, [#allocation6], %s499_s21, %s499_s21, %s500_s22  }
  0x22   :  { %492 = dma.done.wait [#allocation3], 128  }
  0x23   :  { %493 = vsyncadd [#allocation3], 4294967168 }
  0x24   :  { %494 = dma.done.wait [#allocation6], 2048  }
  0x25   :  { %495 = vsyncadd [#allocation6], 4294965248  ;;  %v503_v0 = vmov 0.0   ;;  %vm504_vm0 = vmmov 0   ;;  %v392_v1 = vld [vmem:[#allocation5 + $0x38] sm:$0xff]   ;;  %v393_v2 = vld [vmem:[#allocation5 + $0x30] sm:$0xff]  }
  0x26   :  { %344 = vmatprep.subr.bf16.mxu0 %v503_v0  ;;  %360 = vmatprep.mubr.msk.bf16.mxu0 %vm504_vm0, %v503_v0  ;;  %v394_v3 = vld [vmem:[#allocation5 + $0x28] sm:$0xff]   ;;  %v395_v4 = vld [vmem:[#allocation5 + $0x20] sm:$0xff]   ;;  %v396_v5 = vld [vmem:[#allocation5 + $0x18] sm:$0xff]   ;;  %s505_s11 = smov [#allocation8]  }
  0x27   :  { %364 = vmatprep.subr.bf16.mxu1 %v503_v0  ;;  %380 = vmatprep.mubr.msk.bf16.mxu1 %vm504_vm0, %v503_v0  ;;  %v397_v6 = vld [vmem:[#allocation5 + $0x10] sm:$0xff]   ;;  %v398_v7 = vld [vmem:[#allocation5 + $0x8] sm:$0xff]   ;;  %v399_v8 = vld [vmem:[#allocation5] sm:$0xff]  }
  0x28   :  { %345 = vmatpush3.bf16.msra.mxu0 %v392_v1  ;;  %v61_v9 = vld [vmem:[#allocation2] sm:$0xff]  ;;  %v401_v12 = vld [vmem:[#allocation7 + $0x30] sm:$0xff]   ;;  %v402_v13 = vld [vmem:[#allocation7 + $0x28] sm:$0xff]  }
  0x29   :  { %346 = vmatprep.subr.bf16.mxu0 %v503_v0  ;;  %v79_v10 = vpack.c.bf16 %v61_v9, %v61_v9  ;;  %v400_v11 = vld [vmem:[#allocation7 + $0x38] sm:$0xff]   ;;  %v403_v14 = vld [vmem:[#allocation7 + $0x20] sm:$0xff]   ;;  %v405_v16 = vld [vmem:[#allocation7 + $0x10] sm:$0xff]  }
  0x2a   :  { %365 = vmatpush3.bf16.msra.mxu1 %v400_v11  ;;  %v404_v15 = vld [vmem:[#allocation7 + $0x18] sm:$0xff]   ;;  %v406_v17 = vld [vmem:[#allocation7 + $0x8] sm:$0xff]   ;;  %v407_v18 = vld [vmem:[#allocation7] sm:$0xff]  }
  0x2b   :  { %366 = vmatprep.subr.bf16.mxu1 %v503_v0  ;;  %v308_v19 = vld [vmem:[%s556_s2] ss:$0 sm:$0xff]  ;;  %s298_s2 = sshll.u32 %s505_s11, 4  ;;  %s299_s2 = int_to_ptr.vmem [resolvable:$true] %s298_s2 }
  0x2c   :  { %347 = vmatpush3.bf16.msra.mxu0 %v393_v2  ;;  %v317_v31 = vld [vmem:[%s558_s4] ss:$0 sm:$0xff]  ;;  %s472_s12 = scalar_lea.vmem %s299_s2, 128  ;;  %p477_p2 = scmp.lt.s32.totalorder %s299_s2, %s299_s2 }
  0x2d   :  { %348 = vmatprep.subr.bf16.mxu0 %v503_v0  ;;  %p473_p1 = scmp.ne.s32.totalorder %s299_s2, %s472_s12  ;;  %p478_p3 = scmp.lt.s32.totalorder %s472_s12, %s472_s12 }
  0x2e   :  { %367 = vmatpush3.bf16.msra.mxu1 %v401_v12 }
  0x2f   :  { %368 = vmatprep.subr.bf16.mxu1 %v503_v0  ;;  %p479_p4 = por %p478_p3, %p477_p2 }
  0x30   :  { %349 = vmatpush3.bf16.msra.mxu0 %v394_v3 }
  0x31   :  { %350 = vmatprep.subr.bf16.mxu0 %v503_v0  ;;  %p480_p5 = pnand %p479_p4, %p473_p1 }
  0x32   :  { %369 = vmatpush3.bf16.msra.mxu1 %v402_v13 }
  0x33   :  { %370 = vmatprep.subr.bf16.mxu1 %v503_v0 }
  0x34   :  { %351 = vmatpush3.bf16.msra.mxu0 %v395_v4 }
  0x35   :  { %352 = vmatprep.subr.bf16.mxu0 %v503_v0 }
  0x36   :  { %371 = vmatpush3.bf16.msra.mxu1 %v403_v14 }
  0x37   :  { %372 = vmatprep.subr.bf16.mxu1 %v503_v0 }
  0x38   :  { %353 = vmatpush3.bf16.msra.mxu0 %v396_v5 }
  0x39   :  { %354 = vmatprep.subr.bf16.mxu0 %v503_v0 }
  0x3a   :  { %373 = vmatpush3.bf16.msra.mxu1 %v404_v15 }
  0x3b   :  { %374 = vmatprep.subr.bf16.mxu1 %v503_v0 }
  0x3c   :  { %355 = vmatpush3.bf16.msra.mxu0 %v397_v6 }
  0x3d   :  { %356 = vmatprep.subr.bf16.mxu0 %v503_v0 }
  0x3e   :  { %375 = vmatpush3.bf16.msra.mxu1 %v405_v16 }
  0x3f   :  { %376 = vmatprep.subr.bf16.mxu1 %v503_v0 }
  0x40   :  { %357 = vmatpush3.bf16.msra.mxu0 %v398_v7 }
  0x41   :  { %358 = vmatprep.subr.bf16.mxu0 %v503_v0 }
  0x42   :  { %377 = vmatpush3.bf16.msra.mxu1 %v406_v17 }
  0x43   :  { %378 = vmatprep.subr.bf16.mxu1 %v503_v0 }
  0x44   :  { %359 = vmatpush3.bf16.msra.mxu0 %v399_v8 }
  0x46   :  { %379 = vmatpush3.bf16.msra.mxu1 %v407_v18 }
  0x47   :  { %361 = vmatmul.mubr.bf16.vlgmr.msra.gmra.mxu0 %v79_v10 }
 0x107   :  { %v168_v20 = vpop.f32.mrf.mxu0 }
 0x108   :  { %v169_v21 = vadd.f32 %v308_v19, %v168_v20 }
 0x109   :  { %v362_v22 = vpop.f32.mrf.mxu0 }
 0x10a   :  { %v174_v23 = vsub.f32 0.0, %v169_v21 }
 0x10b   :  { %v171_v24 = vpop.f32.mrf.mxu0 }
 0x10c   :  { %v175_v25 = vmul.f32 1.442695, %v174_v23 }
 0x10d   :  { %v363_v26 = vpop.f32.mrf.mxu0 }
 0x10e   :  { %408 = vpow2.f32 %v175_v25 }
 0x11b   :  { %v409_v27 = vpop.eup %408 }
 0x11c   :  { %v177_v28 = vadd.f32 1.0, %v409_v27 }
 0x11e   :  { %410 = vrcp.f32 %v177_v28 }
 0x12b   :  { %v411_v29 = vpop.eup %410 }
 0x12c   :  { %v196_v30 = vpack.c.bf16 %v411_v29, %v411_v29 }
 0x12e   :  { %381 = vmatmul.mubr.bf16.vlgmr.msra.gmra.mxu1 %v196_v30 }
 0x1ee   :  { %v285_v32 = vpop.f32.mrf.mxu1 }
 0x1ef   :  { %v286_v33 = vadd.f32 %v317_v31, %v285_v32 }
 0x1f0   :  { %v382_v34 = vpop.f32.mrf.mxu1 }
 0x1f1   :  { %291 = vst [vmem:[#allocation8] sm:$0xff] %v286_v33 }
 0x1f2   :  { %v288_v35 = vpop.f32.mrf.mxu1 }
 0x1f3   :  { %483 = shalt.err (!%p480_p5)
}
 0x1f4   :  { %301 = dma.vmem_to_hbm [thread:$0]  %s299_s2, 128, %s559_s5, [#allocation4]   ;;  %v383_v36 = vpop.f32.mrf.mxu1 }
 0x1f5   :  { %496 = dma.done.wait [#allocation4], 128  }
 0x1f6   :  { %497 = vsyncadd [#allocation4], 4294967168 }
 0x1f7   :  { %305 = vsyncpa [#allocation3], 1 }
 0x1f8   :  { %306 = vsyncpa [#allocation6], 1 }
 0x1f9   :  { %307 = vsyncpa [#allocation4], 1 }

</bundles_post_ra>
